<compile_context>
chip_gen: v7x
topology: tpu7x:2x2x1
jax: 0.10.0
libtpu: 0.0.40
codegen_flags: <defaults>
</compile_context>

<pallas_src>
import functools
from typing import NamedTuple

import jax
import jax.numpy as jnp
from jax.experimental import pallas as pl
from jax.experimental.pallas import tpu as pltpu

_LANE = 128   # pad granularity; bump to 256 on v6e/v7x for wide hidden layers
_SUB = 8


def _rup(n, m):
    return ((n + m - 1) // m) * m


def _pad2d(a, rows, cols):
    r, c = a.shape
    return jnp.pad(a, ((0, rows - r), (0, cols - c)))


# ---------------------------------------------------------------------------
# Fused CVAE kernel (built per layer-count; everything stays in VMEM/vregs)
# ---------------------------------------------------------------------------
def _build_cvae_kernel(n_hidden, hp, rhp, latent_pad, zc_pad, input_pad):
    n_w = 2 * n_hidden + 2  # enc stack + merged head + dec stack + dec out

    def kernel(*refs):
        f32 = jnp.float32
        bf16 = jnp.bfloat16

        xc = refs[0][...]            # (tb, xc_pad)  bf16  = [x | c | 0]
        cz = refs[1][...]            # (tb, zc_pad)  f32   = c shifted past z
        eps = refs[2][...]           # (tb, latent_pad) f32
        w_refs = refs[3:3 + n_w]     # bf16 weights, VMEM-resident
        b_all = refs[3 + n_w][...]   # (rows, max_w) f32 packed biases
        xrec_ref, mu_ref, lv_ref = refs[3 + n_w + 1:]

        def bias(r, w):
            return b_all[r:r + 1, :w]

        wi = 0
        bi = 0

        # ---- encoder stack (concat(x, c) folded into layer-0 weight rows) ----
        h = xc
        for li in range(n_hidden):
            acc = jnp.dot(h.astype(bf16), w_refs[wi][...],
                          preferred_element_type=f32)
            h = jnp.tanh(acc + bias(bi, hp[li]))
            wi += 1
            bi += 1

        # ---- merged mu / logvar head: one matmul, slice in-kernel ----
        ml = (jnp.dot(h.astype(bf16), w_refs[wi][...],
                      preferred_element_type=f32)
              + bias(bi, 2 * latent_pad))
        wi += 1
        bi += 1
        mu = ml[:, :latent_pad]          # padded lanes are exactly zero
        logvar = ml[:, latent_pad:]      # padded lanes are exactly zero

        # ---- reparameterize (f32: EUP exp + VALU mul/add) ----
        z = mu + eps * jnp.exp(0.5 * logvar)

        # ---- decoder: concat(z, c) is a VPU add into z's zero padding lanes ----
        if zc_pad > latent_pad:
            z = jnp.concatenate(
                [z, jnp.zeros((z.shape[0], zc_pad - latent_pad), f32)], axis=1)
        d = z + cz                       # = [z | c | 0]
        for li in range(n_hidden):
            acc = jnp.dot(d.astype(bf16), w_refs[wi][...],
                          preferred_element_type=f32)
            d = jnp.tanh(acc + bias(bi, rhp[li]))
            wi += 1
            bi += 1

        # ---- decoder output layer (linear, no activation) ----
        xrec = (jnp.dot(d.astype(bf16), w_refs[wi][...],
                        preferred_element_type=f32)
                + bias(bi, input_pad))

        xrec_ref[...] = xrec
        mu_ref[...] = mu
        lv_ref[...] = logvar

    return kernel


# ---------------------------------------------------------------------------
# Parameter init (PyTorch-style) + packing into padded, fused-kernel layout
# ---------------------------------------------------------------------------
def _init_linear(key, in_dim, out_dim):
    kw, kb = jax.random.split(key)
    bound = 1.0 / jnp.sqrt(jnp.float32(in_dim))
    w = jax.random.uniform(kw, (in_dim, out_dim), jnp.float32, -bound, bound)
    b = jax.random.uniform(kb, (out_dim,), jnp.float32, -bound, bound)
    return w, b


def init_cvae_params(key, input_dim, output_dim, latent_dim, hidden_layers):
    params = {"encoder": [], "decoder": []}
    keys = jax.random.split(key, len(hidden_layers) * 2 + 3)
    ki = 0

    prev = input_dim + output_dim
    for h in hidden_layers:
        params["encoder"].append(_init_linear(keys[ki], prev, h)); ki += 1
        prev = h
    params["fc_mu"] = _init_linear(keys[ki], prev, latent_dim); ki += 1
    params["fc_logvar"] = _init_linear(keys[ki], prev, latent_dim); ki += 1

    prev = latent_dim + output_dim
    for h in reversed(hidden_layers):
        params["decoder"].append(_init_linear(keys[ki], prev, h)); ki += 1
        prev = h
    params["decoder_out"] = _init_linear(keys[ki], prev, input_dim); ki += 1
    return params


class CVAEMeta(NamedTuple):
    input_dim: int
    output_dim: int
    latent_dim: int
    hidden_layers: tuple
    input_pad: int
    latent_pad: int
    xc_pad: int
    zc_pad: int
    hp: tuple
    rhp: tuple


def pack_cvae_params(params, input_dim, output_dim, latent_dim, hidden_layers):
    assert len(hidden_layers) >= 1
    n_hidden = len(hidden_layers)
    hp = tuple(_rup(h, _LANE) for h in hidden_layers)
    rhp = tuple(reversed(hp))
    ip = _rup(input_dim, _LANE)
    lp = _rup(latent_dim, _LANE)
    xcw = _rup(input_dim + output_dim, _LANE)
    zcw = _rup(latent_dim + output_dim, _LANE)

    weights = []
    bias_rows = []

    # encoder layer 0: concat(x, c) folded -> rows [Wx; Wc] in one (xcw, hp0) tile
    w0, b0 = params["encoder"][0]
    w0p = jnp.zeros((xcw, hp[0]), jnp.float32)
    w0p = w0p.at[:input_dim + output_dim, :hidden_layers[0]].set(w0)
    weights.append(w0p)
    bias_rows.append(b0)
    for li in range(1, n_hidden):
        w, b = params["encoder"][li]
        weights.append(_pad2d(w, hp[li - 1], hp[li]))
        bias_rows.append(b)

    # merged mu / logvar head: output columns are [mu | logvar]
    wmu, bmu = params["fc_mu"]
    wlv, blv = params["fc_logvar"]
    weights.append(jnp.concatenate(
        [_pad2d(wmu, hp[-1], lp), _pad2d(wlv, hp[-1], lp)], axis=1))
    bias_rows.append(jnp.concatenate(
        [jnp.pad(bmu, (0, lp - latent_dim)), jnp.pad(blv, (0, lp - latent_dim))]))

    # decoder layer 0: concat(z, c) folded -> rows [Wz; Wc] in one (zcw, rhp0) tile
    rev_hidden = list(reversed(hidden_layers))
    wd0, bd0 = params["decoder"][0]
    wd0p = jnp.zeros((zcw, rhp[0]), jnp.float32)
    wd0p = wd0p.at[:latent_dim + output_dim, :rev_hidden[0]].set(wd0)
    weights.append(wd0p)
    bias_rows.append(bd0)
    for li in range(1, n_hidden):
        w, b = params["decoder"][li]
        weights.append(_pad2d(w, rhp[li - 1], rhp[li]))
        bias_rows.append(b)

    # decoder output layer
    wo, bo = params["decoder_out"]
    weights.append(_pad2d(wo, rhp[-1], ip))
    bias_rows.append(bo)

    # bf16 weights for the MXU (accumulation stays f32 in-kernel)
    weights = [w.astype(jnp.bfloat16) for w in weights]

    # all biases packed into ONE f32 array -> single DMA, sliced in-kernel
    max_w = max(hp + rhp + (2 * lp, ip))
    rows_pad = _rup(len(bias_rows), _SUB)
    bias_mat = jnp.zeros((rows_pad, max_w), jnp.float32)
    for r, b in enumerate(bias_rows):
        bias_mat = bias_mat.at[r, :b.shape[0]].set(b)

    meta = CVAEMeta(input_dim, output_dim, latent_dim, tuple(hidden_layers),
                    ip, lp, xcw, zcw, hp, rhp)
    return meta, weights + [bias_mat]


# ---------------------------------------------------------------------------
# Fused forward (one pallas_call, batch-tiled grid)
# ---------------------------------------------------------------------------
@functools.partial(jax.jit, static_argnums=(0,))
def cvae_forward_pallas(meta, packed, x, c, eps):
    B = x.shape[0]
    bp = _rup(max(B, 1), _SUB)
    tile_b = bp if bp <= 128 else 128
    bp = _rup(bp, tile_b)
    nb = bp // tile_b

    # pack [x | c] into one lane block (encoder concat folded at pack time)
    xc = jnp.zeros((bp, meta.xc_pad), jnp.float32)
    xc = xc.at[:B, :meta.input_dim].set(x)
    xc = xc.at[:B, meta.input_dim:meta.input_dim + meta.output_dim].set(c)
    xc = xc.astype(jnp.bfloat16)
    # c shifted past the latent lanes (decoder concat becomes a VPU add)
    cz = jnp.zeros((bp, meta.zc_pad), jnp.float32)
    cz = cz.at[:B, meta.latent_dim:meta.latent_dim + meta.output_dim].set(c)
    ep = jnp.zeros((bp, meta.latent_pad), jnp.float32)
    ep = ep.at[:B, :meta.latent_dim].set(eps)
    # TODO(synk): eps could be generated in-kernel with pltpu.prng_seed /
    # pltpu.prng_random_bits (per-call randn_like semantics); kept host-side
    # here so the kernel is verifiable against the reference.

    inputs = [xc, cz, ep] + list(packed)
    n_hidden = len(meta.hidden_layers)
    kernel = _build_cvae_kernel(n_hidden, meta.hp, meta.rhp,
                                meta.latent_pad, meta.zc_pad, meta.input_pad)

    out_shapes = (
        jax.ShapeDtypeStruct((bp, meta.input_pad), jnp.float32),   # x_recon
        jax.ShapeDtypeStruct((bp, meta.latent_pad), jnp.float32),  # mu
        jax.ShapeDtypeStruct((bp, meta.latent_pad), jnp.float32),  # logvar
    )

    in_specs = [
        pl.BlockSpec((tile_b, meta.xc_pad), lambda i: (i, 0)),
        pl.BlockSpec((tile_b, meta.zc_pad), lambda i: (i, 0)),
        pl.BlockSpec((tile_b, meta.latent_pad), lambda i: (i, 0)),
    ] + [pl.BlockSpec(a.shape, lambda i: (0, 0)) for a in packed]  # resident
    out_specs = (
        pl.BlockSpec((tile_b, meta.input_pad), lambda i: (i, 0)),
        pl.BlockSpec((tile_b, meta.latent_pad), lambda i: (i, 0)),
        pl.BlockSpec((tile_b, meta.latent_pad), lambda i: (i, 0)),
    )

    # Advisory cost estimate (bf16 weights) + right-sized VMEM limit.
    weights = packed[:-1]
    flops = 2 * bp * sum(int(w.shape[0]) * int(w.shape[1]) for w in weights)
    trans = bp * (sum(meta.hp) + sum(meta.rhp) + meta.latent_pad)
    param_bytes = sum(int(a.size) * a.dtype.itemsize for a in packed)
    io_bytes = (int(xc.size) * 2 + int(cz.size) * 4 + int(ep.size) * 4
                + 4 * bp * (meta.input_pad + 2 * meta.latent_pad))
    tile_io_bytes = tile_b * (2 * meta.xc_pad + 4 * meta.zc_pad
                              + 4 * meta.latent_pad
                              + 4 * (meta.input_pad + 2 * meta.latent_pad))
    vmem = 2 * (param_bytes + tile_io_bytes) + (4 << 20)   # 2x: double buffers
    vmem = int(max(8 << 20, min(vmem, 64 << 20)))          # cap for v7x VMEM

    xrec_p, mu_p, lv_p = pl.pallas_call(
        kernel,
        grid=(nb,),
        out_shape=out_shapes,
        in_specs=in_specs,
        out_specs=out_specs,
        compiler_params=pltpu.CompilerParams(
            dimension_semantics=("parallel",),
            vmem_limit_bytes=vmem),
        cost_estimate=pl.CostEstimate(flops=int(flops),
                                      transcendentals=int(trans),
                                      bytes_accessed=int(param_bytes + io_bytes)),
    )(*inputs)

    return (xrec_p[:B, :meta.input_dim],
            mu_p[:B, :meta.latent_dim],
            lv_p[:B, :meta.latent_dim])


# ---------------------------------------------------------------------------
# Pure-JAX references for correctness checks
# ---------------------------------------------------------------------------
def _hdot(a, b):
    return jnp.dot(a, b, precision=jax.lax.Precision.HIGHEST)


def cvae_forward_ref(params, x, c, eps):
    h = jnp.concatenate([x, c], axis=1)
    for (w, b) in params["encoder"]:
        h = jnp.tanh(_hdot(h, w) + b)
    mu = _hdot(h, params["fc_mu"][0]) + params["fc_mu"][1]
    logvar = _hdot(h, params["fc_logvar"][0]) + params["fc_logvar"][1]
    z = mu + eps * jnp.exp(0.5 * logvar)
    d = jnp.concatenate([z, c], axis=1)
    for (w, b) in params["decoder"]:
        d = jnp.tanh(_hdot(d, w) + b)
    x_recon = _hdot(d, params["decoder_out"][0]) + params["decoder_out"][1]
    return x_recon, mu, logvar


def cvae_forward_bf16_ref(params, x, c, eps):
    """Emulates the kernel numerics: bf16 matmul operands, f32 accumulation."""
    bf16, f32 = jnp.bfloat16, jnp.float32

    def mm(a, w):
        return jnp.dot(a.astype(bf16), w.astype(bf16),
                       preferred_element_type=f32)

    h = jnp.concatenate([x, c], axis=1)
    for (w, b) in params["encoder"]:
        h = jnp.tanh(mm(h, w) + b)
    mu = mm(h, params["fc_mu"][0]) + params["fc_mu"][1]
    logvar = mm(h, params["fc_logvar"][0]) + params["fc_logvar"][1]
    z = mu + eps * jnp.exp(0.5 * logvar)
    d = jnp.concatenate([z, c], axis=1)
    for (w, b) in params["decoder"]:
        d = jnp.tanh(mm(d, w) + b)
    x_recon = mm(d, params["decoder_out"][0]) + params["decoder_out"][1]
    return x_recon, mu, logvar


# ---------------------------------------------------------------------------
if __name__ == "__main__":
    input_dim = 16      # x features
    output_dim = 8      # condition c features
    latent_dim = 4
    hidden_layers = (32, 16)
    batch = 2

    root = jax.random.PRNGKey(0)
    k_params, k_x, k_c, k_eps = jax.random.split(root, 4)

    # TODO(synk): activation_function ctor arg is fixed to tanh here.
    params = init_cvae_params(k_params, input_dim, output_dim,
                              latent_dim, hidden_layers)
    meta, packed = pack_cvae_params(params, input_dim, output_dim,
                                    latent_dim, hidden_layers)

    x = jax.random.normal(k_x, (batch, input_dim), jnp.float32)
    c = jax.random.normal(k_c, (batch, output_dim), jnp.float32)
    eps = jax.random.normal(k_eps, (batch, latent_dim), jnp.float32)

    x_recon, mu, logvar = cvae_forward_pallas(meta, packed, x, c, eps)
    jax.block_until_ready((x_recon, mu, logvar))

    assert x_recon.shape == (batch, input_dim)
    assert mu.shape == (batch, latent_dim)
    assert logvar.shape == (batch, latent_dim)

    # Tight check vs. a reference that emulates the kernel numerics (bf16
    # matmul operands, f32 accumulation/elementwise).
    xr_b, mu_b, lv_b = cvae_forward_bf16_ref(params, x, c, eps)
    assert jnp.allclose(x_recon, xr_b, rtol=2e-3, atol=2e-3)
    assert jnp.allclose(mu, mu_b, rtol=2e-3, atol=2e-3)
    assert jnp.allclose(logvar, lv_b, rtol=2e-3, atol=2e-3)

    # Loose sanity check vs. the full-precision f32 module semantics.
    xr_f, mu_f, lv_f = cvae_forward_ref(params, x, c, eps)
    assert jnp.allclose(x_recon, xr_f, rtol=5e-2, atol=5e-2)
    assert jnp.allclose(mu, mu_f, rtol=5e-2, atol=5e-2)
    assert jnp.allclose(logvar, lv_f, rtol=5e-2, atol=5e-2)

    print("KERNEL_OK")
</pallas_src>

<mosaic_0001>
module attributes {stable_mosaic.version = 11 : i64} {
  func.func @kernel(%arg0: i32, %arg1: memref<8x128xbf16, #tpu.memory_space<vmem>>, %arg2: memref<8x128xf32, #tpu.memory_space<vmem>>, %arg3: memref<8x128xf32, #tpu.memory_space<vmem>>, %arg4: memref<128x128xbf16, #tpu.memory_space<vmem>>, %arg5: memref<128x128xbf16, #tpu.memory_space<vmem>>, %arg6: memref<128x256xbf16, #tpu.memory_space<vmem>>, %arg7: memref<128x128xbf16, #tpu.memory_space<vmem>>, %arg8: memref<128x128xbf16, #tpu.memory_space<vmem>>, %arg9: memref<128x128xbf16, #tpu.memory_space<vmem>>, %arg10: memref<8x256xf32, #tpu.memory_space<vmem>>, %arg11: memref<8x128xf32, #tpu.memory_space<vmem>>, %arg12: memref<8x128xf32, #tpu.memory_space<vmem>>, %arg13: memref<8x128xf32, #tpu.memory_space<vmem>>) attributes {dimension_semantics = [#tpu.dimension_semantics<parallel>], iteration_bounds = array<i64: 1>, scalar_prefetch = 0 : i64, scratch_operands = 0 : i64, tpu.core_type = #tpu.core_type<tc>, window_params = [{transform_indices = @transform_0, window_bounds = array<i64: 8, 128>}, {transform_indices = @transform_1, window_bounds = array<i64: 8, 128>}, {transform_indices = @transform_2, window_bounds = array<i64: 8, 128>}, {pipeline_mode = #tpu.pipeline_mode<synchronous>, transform_indices = @transform_3, window_bounds = array<i64: 128, 128>}, {pipeline_mode = #tpu.pipeline_mode<synchronous>, transform_indices = @transform_4, window_bounds = array<i64: 128, 128>}, {pipeline_mode = #tpu.pipeline_mode<synchronous>, transform_indices = @transform_5, window_bounds = array<i64: 128, 256>}, {pipeline_mode = #tpu.pipeline_mode<synchronous>, transform_indices = @transform_6, window_bounds = array<i64: 128, 128>}, {pipeline_mode = #tpu.pipeline_mode<synchronous>, transform_indices = @transform_7, window_bounds = array<i64: 128, 128>}, {pipeline_mode = #tpu.pipeline_mode<synchronous>, transform_indices = @transform_8, window_bounds = array<i64: 128, 128>}, {pipeline_mode = #tpu.pipeline_mode<synchronous>, transform_indices = @transform_9, window_bounds = array<i64: 8, 256>}, {transform_indices = @transform_10, window_bounds = array<i64: 8, 128>}, {transform_indices = @transform_11, window_bounds = array<i64: 8, 128>}, {transform_indices = @transform_12, window_bounds = array<i64: 8, 128>}]} {
    %c0 = arith.constant 0 : index
    %c0_0 = arith.constant 0 : index
    %0 = vector.load %arg1[%c0, %c0_0] : memref<8x128xbf16, #tpu.memory_space<vmem>>, vector<8x128xbf16>
    %c0_1 = arith.constant 0 : index
    %c0_2 = arith.constant 0 : index
    %1 = vector.load %arg2[%c0_1, %c0_2] : memref<8x128xf32, #tpu.memory_space<vmem>>, vector<8x128xf32>
    %c0_3 = arith.constant 0 : index
    %c0_4 = arith.constant 0 : index
    %2 = vector.load %arg3[%c0_3, %c0_4] : memref<8x128xf32, #tpu.memory_space<vmem>>, vector<8x128xf32>
    %c0_5 = arith.constant 0 : index
    %c0_6 = arith.constant 0 : index
    %3 = vector.load %arg10[%c0_5, %c0_6] : memref<8x256xf32, #tpu.memory_space<vmem>>, vector<8x256xf32>
    %c0_7 = arith.constant 0 : index
    %c0_8 = arith.constant 0 : index
    %4 = vector.load %arg4[%c0_7, %c0_8] : memref<128x128xbf16, #tpu.memory_space<vmem>>, vector<128x128xbf16>
    %cst = arith.constant dense<0.000000e+00> : vector<8x128xf32>
    %5 = tpu.matmul %0, %4, %cst {dimension_numbers = #tpu.dot_dimension_numbers<[1], [0], [0], [1], [0, 0, 1, 1], [], []>} : vector<8x128xbf16>, vector<128x128xbf16>, vector<8x128xf32> -> vector<8x128xf32>
    %6 = vector.extract_strided_slice %3 {offsets = [0, 0], sizes = [1, 128], strides = [1, 1]} : vector<8x256xf32> to vector<1x128xf32>
    %7 = vector.broadcast %6 : vector<1x128xf32> to vector<8x128xf32>
    %8 = arith.addf %5, %7 : vector<8x128xf32>
    %9 = math.tanh %8 : vector<8x128xf32>
    %10 = arith.truncf %9 : vector<8x128xf32> to vector<8x128xbf16>
    %c0_9 = arith.constant 0 : index
    %c0_10 = arith.constant 0 : index
    %11 = vector.load %arg5[%c0_9, %c0_10] : memref<128x128xbf16, #tpu.memory_space<vmem>>, vector<128x128xbf16>
    %cst_11 = arith.constant dense<0.000000e+00> : vector<8x128xf32>
    %12 = tpu.matmul %10, %11, %cst_11 {dimension_numbers = #tpu.dot_dimension_numbers<[1], [0], [0], [1], [0, 0, 1, 1], [], []>} : vector<8x128xbf16>, vector<128x128xbf16>, vector<8x128xf32> -> vector<8x128xf32>
    %13 = vector.extract_strided_slice %3 {offsets = [1, 0], sizes = [1, 128], strides = [1, 1]} : vector<8x256xf32> to vector<1x128xf32>
    %14 = vector.broadcast %13 : vector<1x128xf32> to vector<8x128xf32>
    %15 = arith.addf %12, %14 : vector<8x128xf32>
    %16 = math.tanh %15 : vector<8x128xf32>
    %17 = arith.truncf %16 : vector<8x128xf32> to vector<8x128xbf16>
    %c0_12 = arith.constant 0 : index
    %c0_13 = arith.constant 0 : index
    %18 = vector.load %arg6[%c0_12, %c0_13] : memref<128x256xbf16, #tpu.memory_space<vmem>>, vector<128x256xbf16>
    %cst_14 = arith.constant dense<0.000000e+00> : vector<8x256xf32>
    %19 = tpu.matmul %17, %18, %cst_14 {dimension_numbers = #tpu.dot_dimension_numbers<[1], [0], [0], [1], [0, 0, 1, 1], [], []>} : vector<8x128xbf16>, vector<128x256xbf16>, vector<8x256xf32> -> vector<8x256xf32>
    %20 = vector.extract_strided_slice %3 {offsets = [2, 0], sizes = [1, 256], strides = [1, 1]} : vector<8x256xf32> to vector<1x256xf32>
    %21 = vector.broadcast %20 : vector<1x256xf32> to vector<8x256xf32>
    %22 = arith.addf %19, %21 : vector<8x256xf32>
    %23 = vector.extract_strided_slice %22 {offsets = [0, 0], sizes = [8, 128], strides = [1, 1]} : vector<8x256xf32> to vector<8x128xf32>
    %24 = vector.extract_strided_slice %22 {offsets = [0, 128], sizes = [8, 128], strides = [1, 1]} : vector<8x256xf32> to vector<8x128xf32>
    %cst_15 = arith.constant 5.000000e-01 : f32
    %25 = vector.broadcast %cst_15 : f32 to vector<8x128xf32>
    %26 = arith.mulf %25, %24 : vector<8x128xf32>
    %27 = math.exp %26 : vector<8x128xf32>
    %28 = arith.mulf %2, %27 : vector<8x128xf32>
    %29 = arith.addf %23, %28 : vector<8x128xf32>
    %30 = arith.addf %29, %1 : vector<8x128xf32>
    %31 = arith.truncf %30 : vector<8x128xf32> to vector<8x128xbf16>
    %c0_16 = arith.constant 0 : index
    %c0_17 = arith.constant 0 : index
    %32 = vector.load %arg7[%c0_16, %c0_17] : memref<128x128xbf16, #tpu.memory_space<vmem>>, vector<128x128xbf16>
    %cst_18 = arith.constant dense<0.000000e+00> : vector<8x128xf32>
    %33 = tpu.matmul %31, %32, %cst_18 {dimension_numbers = #tpu.dot_dimension_numbers<[1], [0], [0], [1], [0, 0, 1, 1], [], []>} : vector<8x128xbf16>, vector<128x128xbf16>, vector<8x128xf32> -> vector<8x128xf32>
    %34 = vector.extract_strided_slice %3 {offsets = [3, 0], sizes = [1, 128], strides = [1, 1]} : vector<8x256xf32> to vector<1x128xf32>
    %35 = vector.broadcast %34 : vector<1x128xf32> to vector<8x128xf32>
    %36 = arith.addf %33, %35 : vector<8x128xf32>
    %37 = math.tanh %36 : vector<8x128xf32>
    %38 = arith.truncf %37 : vector<8x128xf32> to vector<8x128xbf16>
    %c0_19 = arith.constant 0 : index
    %c0_20 = arith.constant 0 : index
    %39 = vector.load %arg8[%c0_19, %c0_20] : memref<128x128xbf16, #tpu.memory_space<vmem>>, vector<128x128xbf16>
    %cst_21 = arith.constant dense<0.000000e+00> : vector<8x128xf32>
    %40 = tpu.matmul %38, %39, %cst_21 {dimension_numbers = #tpu.dot_dimension_numbers<[1], [0], [0], [1], [0, 0, 1, 1], [], []>} : vector<8x128xbf16>, vector<128x128xbf16>, vector<8x128xf32> -> vector<8x128xf32>
    %41 = vector.extract_strided_slice %3 {offsets = [4, 0], sizes = [1, 128], strides = [1, 1]} : vector<8x256xf32> to vector<1x128xf32>
    %42 = vector.broadcast %41 : vector<1x128xf32> to vector<8x128xf32>
    %43 = arith.addf %40, %42 : vector<8x128xf32>
    %44 = math.tanh %43 : vector<8x128xf32>
    %45 = arith.truncf %44 : vector<8x128xf32> to vector<8x128xbf16>
    %c0_22 = arith.constant 0 : index
    %c0_23 = arith.constant 0 : index
    %46 = vector.load %arg9[%c0_22, %c0_23] : memref<128x128xbf16, #tpu.memory_space<vmem>>, vector<128x128xbf16>
    %cst_24 = arith.constant dense<0.000000e+00> : vector<8x128xf32>
    %47 = tpu.matmul %45, %46, %cst_24 {dimension_numbers = #tpu.dot_dimension_numbers<[1], [0], [0], [1], [0, 0, 1, 1], [], []>} : vector<8x128xbf16>, vector<128x128xbf16>, vector<8x128xf32> -> vector<8x128xf32>
    %48 = vector.extract_strided_slice %3 {offsets = [5, 0], sizes = [1, 128], strides = [1, 1]} : vector<8x256xf32> to vector<1x128xf32>
    %49 = vector.broadcast %48 : vector<1x128xf32> to vector<8x128xf32>
    %50 = arith.addf %47, %49 : vector<8x128xf32>
    %c0_25 = arith.constant 0 : index
    %c0_26 = arith.constant 0 : index
    %51 = vector.load %arg11[%c0_25, %c0_26] : memref<8x128xf32, #tpu.memory_space<vmem>>, vector<8x128xf32>
    tpu.vector_store %arg11[%c0_25, %c0_26], %50 {strides = array<i32>} : memref<8x128xf32, #tpu.memory_space<vmem>>, vector<8x128xf32>,
    %c0_27 = arith.constant 0 : index
    %c0_28 = arith.constant 0 : index
    %52 = vector.load %arg12[%c0_27, %c0_28] : memref<8x128xf32, #tpu.memory_space<vmem>>, vector<8x128xf32>
    tpu.vector_store %arg12[%c0_27, %c0_28], %23 {strides = array<i32>} : memref<8x128xf32, #tpu.memory_space<vmem>>, vector<8x128xf32>,
    %c0_29 = arith.constant 0 : index
    %c0_30 = arith.constant 0 : index
    %53 = vector.load %arg13[%c0_29, %c0_30] : memref<8x128xf32, #tpu.memory_space<vmem>>, vector<8x128xf32>
    tpu.vector_store %arg13[%c0_29, %c0_30], %24 {strides = array<i32>} : memref<8x128xf32, #tpu.memory_space<vmem>>, vector<8x128xf32>,
    return
  }
  func.func @transform_0(%arg0: i32) -> (i32, i32) {
    %c0_i32 = arith.constant 0 : i32
    %c0_i32_0 = arith.constant 0 : i32
    return %arg0, %c0_i32 : i32, i32
  }
  func.func @transform_1(%arg0: i32) -> (i32, i32) {
    %c0_i32 = arith.constant 0 : i32
    %c0_i32_0 = arith.constant 0 : i32
    return %arg0, %c0_i32 : i32, i32
  }
  func.func @transform_2(%arg0: i32) -> (i32, i32) {
    %c0_i32 = arith.constant 0 : i32
    %c0_i32_0 = arith.constant 0 : i32
    return %arg0, %c0_i32 : i32, i32
  }
  func.func @transform_3(%arg0: i32) -> (i32, i32) {
    %c0_i32 = arith.constant 0 : i32
    %c0_i32_0 = arith.constant 0 : i32
    %c0_i32_1 = arith.constant 0 : i32
    return %c0_i32, %c0_i32_0 : i32, i32
  }
  func.func @transform_4(%arg0: i32) -> (i32, i32) {
    %c0_i32 = arith.constant 0 : i32
    %c0_i32_0 = arith.constant 0 : i32
    %c0_i32_1 = arith.constant 0 : i32
    return %c0_i32, %c0_i32_0 : i32, i32
  }
  func.func @transform_5(%arg0: i32) -> (i32, i32) {
    %c0_i32 = arith.constant 0 : i32
    %c0_i32_0 = arith.constant 0 : i32
    %c0_i32_1 = arith.constant 0 : i32
    return %c0_i32, %c0_i32_0 : i32, i32
  }
  func.func @transform_6(%arg0: i32) -> (i32, i32) {
    %c0_i32 = arith.constant 0 : i32
    %c0_i32_0 = arith.constant 0 : i32
    %c0_i32_1 = arith.constant 0 : i32
    return %c0_i32, %c0_i32_0 : i32, i32
  }
  func.func @transform_7(%arg0: i32) -> (i32, i32) {
    %c0_i32 = arith.constant 0 : i32
    %c0_i32_0 = arith.constant 0 : i32
    %c0_i32_1 = arith.constant 0 : i32
    return %c0_i32, %c0_i32_0 : i32, i32
  }
  func.func @transform_8(%arg0: i32) -> (i32, i32) {
    %c0_i32 = arith.constant 0 : i32
    %c0_i32_0 = arith.constant 0 : i32
    %c0_i32_1 = arith.constant 0 : i32
    return %c0_i32, %c0_i32_0 : i32, i32
  }
  func.func @transform_9(%arg0: i32) -> (i32, i32) {
    %c0_i32 = arith.constant 0 : i32
    %c0_i32_0 = arith.constant 0 : i32
    %c0_i32_1 = arith.constant 0 : i32
    return %c0_i32, %c0_i32_0 : i32, i32
  }
  func.func @transform_10(%arg0: i32) -> (i32, i32) {
    %c0_i32 = arith.constant 0 : i32
    %c0_i32_0 = arith.constant 0 : i32
    return %arg0, %c0_i32 : i32, i32
  }
  func.func @transform_11(%arg0: i32) -> (i32, i32) {
    %c0_i32 = arith.constant 0 : i32
    %c0_i32_0 = arith.constant 0 : i32
    return %arg0, %c0_i32 : i32, i32
  }
  func.func @transform_12(%arg0: i32) -> (i32, i32) {
    %c0_i32 = arith.constant 0 : i32
    %c0_i32_0 = arith.constant 0 : i32
    return %arg0, %c0_i32 : i32, i32
  }
}

</mosaic_0001>

<bundles_post_ra>
// kernel: cvae_forward_pallas.1
= control target key start
LH: loop header
LB: loop body
LE: loop exit
PB: predicated region body
PF: predicated region fallthrough
CT: control target
= control target key end

     0   :  { %18 = vsyncpa [#allocation3], 0  ;;  %s1496_s0 = inlined_call_operand.vmem [shape: bf16[8,128], index: 0, kind: input, shape index: {}]   ;;  %s1497_s1 = inlined_call_operand.vmem [shape: f32[8,128], index: 1, kind: input, shape index: {}]   ;;  %s1498_s2 = inlined_call_operand.vmem [shape: f32[8,128], index: 2, kind: input, shape index: {}]   ;;  %s1499_s3 = inlined_call_operand.vmem [shape: bf16[128,128], index: 3, kind: input, shape index: {}]   ;;  %s1500_s4 = inlined_call_operand.hbm [shape: bf16[128,128], index: 4, kind: input, shape index: {}]   ;;  %s1501_s5 = inlined_call_operand.hbm [shape: bf16[128,256], index: 5, kind: input, shape index: {}]   ;;  %s1502_s6 = inlined_call_operand.hbm [shape: bf16[128,128], index: 6, kind: input, shape index: {}]   ;;  %s1503_s7 = inlined_call_operand.hbm [shape: bf16[128,128], index: 7, kind: input, shape index: {}]   ;;  %s1504_s8 = inlined_call_operand.hbm [shape: bf16[128,128], index: 8, kind: input, shape index: {}]   ;;  %s1505_s9 = inlined_call_operand.vmem [shape: f32[8,256], index: 9, kind: input, shape index: {}]   ;;  %s1506_s10 = inlined_call_operand.vmem [shape: f32[8,128], index: 10, kind: output, shape index: {0}]   ;;  %s1507_s11 = inlined_call_operand.vmem [shape: f32[8,128], index: 11, kind: output, shape index: {1}]   ;;  %s1508_s12 = inlined_call_operand.vmem [shape: f32[8,128], index: 12, kind: output, shape index: {2}]  }
   0x1   :  { %19 = vsyncpa [#allocation5], 0 }
   0x2   :  { %20 = vsyncpa [#allocation8], 0  ;;  %s1233_s21 = smov [#allocation4]   ;;  %s1117_s25 = scalar_lea.hbm %s1501_s5, 2048 }
   0x3   :  { %s46_s22 = sshll.u32 %s1233_s21, 4  ;;  %p1118_p0 = scmp.ne.s32.totalorder %s1501_s5, %s1117_s25  ;;  %s47_s22 = int_to_ptr.vmem [resolvable:$true] %s46_s22 }
   0x4   :  { %p1121_p1 = scmp.lt.u32.totalorder %s1117_s25, %s1501_s5 }
   0x6   :  { %p1123_p2 = pnand %p1121_p1, %p1118_p0 }
   0x8   :  { %1126 = shalt.err (!%p1123_p2)
}
   0x9   :  { %s1127_s30 = scalar_lea.vmem %s47_s22, 2048  ;;  %p1132_p4 = scmp.lt.s32.totalorder %s47_s22, %s47_s22 }
   0xa   :  { %p1128_p3 = scmp.ne.s32.totalorder %s47_s22, %s1127_s30  ;;  %p1133_p5 = scmp.lt.s32.totalorder %s1127_s30, %s1127_s30 }
   0xc   :  { %p1134_p6 = por %p1133_p5, %p1132_p4 }
   0xe   :  { %p1135_p7 = pnand %p1134_p6, %p1128_p3 }
  0x10   :  { %1138 = shalt.err (!%p1135_p7)
}
  0x11   :  { %s1234_s13 = smov 128   ;;  %s1235_s14 = smov 8  }
  0x12   :  { %52 = dma.hbm_to_vmem [thread:$0]  %s1501_s5, 2048, %s47_s22, [#allocation5], %s1234_s13, %s1234_s13, %s1235_s14  }
  0x13   :  { %s1236_s17 = smov [#allocation7]   ;;  %s1237_s19 = smov [#allocation2]  }
  0x14   :  { %s70_s18 = sshll.u32 %s1236_s17, 4  ;;  %s34_s20 = sshll.u32 %s1237_s19, 4  ;;  %s71_s18 = int_to_ptr.vmem [resolvable:$true] %s70_s18  ;;  %s35_s20 = int_to_ptr.vmem [resolvable:$true] %s34_s20 }
  0x15   :  { %s1139_s24 = scalar_lea.hbm %s1503_s7, 1024 }
  0x16   :  { %p1140_p8 = scmp.ne.s32.totalorder %s1503_s7, %s1139_s24  ;;  %p1143_p9 = scmp.lt.u32.totalorder %s1139_s24, %s1503_s7 }
  0x18   :  { %p1145_p10 = pnand %p1143_p9, %p1140_p8 }
  0x1a   :  { %1148 = shalt.err (!%p1145_p10)
}
  0x1b   :  { %s1149_s5 = scalar_lea.vmem %s71_s18, 1024  ;;  %p1154_p12 = scmp.lt.s32.totalorder %s71_s18, %s71_s18 }
  0x1c   :  { %p1150_p11 = scmp.ne.s32.totalorder %s71_s18, %s1149_s5  ;;  %p1155_p13 = scmp.lt.s32.totalorder %s1149_s5, %s1149_s5 }
  0x1e   :  { %p1156_p0 = por %p1155_p13, %p1154_p12 }
  0x20   :  { %p1157_p1 = pnand %p1156_p0, %p1150_p11 }
  0x22   :  { %1160 = shalt.err (!%p1157_p1)
}
  0x23   :  { %s1238_s22 = smov 64   ;;  %s1239_s29 = smov 4  }
  0x24   :  { %76 = dma.hbm_to_vmem [thread:$0]  %s1503_s7, 1024, %s71_s18, [#allocation8], %s1238_s22, %s1238_s22, %s1239_s29  }
  0x25   :  { %s1161_s16 = scalar_lea.hbm %s1500_s4, 1024 }
  0x26   :  { %p1162_p2 = scmp.ne.s32.totalorder %s1500_s4, %s1161_s16  ;;  %p1165_p3 = scmp.lt.u32.totalorder %s1161_s16, %s1500_s4 }
  0x28   :  { %p1167_p4 = pnand %p1165_p3, %p1162_p2 }
  0x2a   :  { %1170 = shalt.err (!%p1167_p4)
}
  0x2b   :  { %s1171_s24 = scalar_lea.vmem %s35_s20, 1024  ;;  %p1176_p6 = scmp.lt.s32.totalorder %s35_s20, %s35_s20 }
  0x2c   :  { %p1172_p5 = scmp.ne.s32.totalorder %s35_s20, %s1171_s24  ;;  %p1177_p7 = scmp.lt.s32.totalorder %s1171_s24, %s1171_s24 }
  0x2e   :  { %p1178_p8 = por %p1177_p7, %p1176_p6 }
  0x30   :  { %p1179_p9 = pnand %p1178_p8, %p1172_p5 }
  0x32   :  { %1182 = shalt.err (!%p1179_p9)
}
  0x33   :  { %40 = dma.hbm_to_vmem [thread:$0]  %s1500_s4, 1024, %s35_s20, [#allocation3], %s1238_s22, %s1238_s22, %s1239_s29  }
  0x34   :  { %s1240_s25 = smov [#allocation6]   ;;  %s1241_s27 = smov [#allocation9]  }
  0x35   :  { %s58_s26 = sshll.u32 %s1240_s25, 4  ;;  %s82_s28 = sshll.u32 %s1241_s27, 4  ;;  %s59_s26 = int_to_ptr.vmem [resolvable:$true] %s58_s26  ;;  %s83_s28 = int_to_ptr.vmem [resolvable:$true] %s82_s28 }
  0x36   :  { %s1183_s13 = scalar_lea.hbm %s1502_s6, 1024 }
  0x37   :  { %p1184_p10 = scmp.ne.s32.totalorder %s1502_s6, %s1183_s13  ;;  %p1187_p11 = scmp.lt.u32.totalorder %s1183_s13, %s1502_s6 }
  0x39   :  { %p1189_p12 = pnand %p1187_p11, %p1184_p10 }
  0x3b   :  { %1192 = shalt.err (!%p1189_p12)
}
  0x3c   :  { %s1193_s4 = scalar_lea.vmem %s59_s26, 1024  ;;  %p1198_p0 = scmp.lt.s32.totalorder %s59_s26, %s59_s26 }
  0x3d   :  { %p1194_p13 = scmp.ne.s32.totalorder %s59_s26, %s1193_s4  ;;  %p1199_p1 = scmp.lt.s32.totalorder %s1193_s4, %s1193_s4 }
  0x3f   :  { %p1200_p2 = por %p1199_p1, %p1198_p0 }
  0x41   :  { %p1201_p3 = pnand %p1200_p2, %p1194_p13 }
  0x43   :  { %1204 = shalt.err (!%p1201_p3)
}
  0x44   :  { %64 = dma.hbm_to_vmem [thread:$0]  %s1502_s6, 1024, %s59_s26, [#allocation5], %s1238_s22, %s1238_s22, %s1239_s29  }
  0x45   :  { %s1205_s24 = scalar_lea.hbm %s1504_s8, 1024 }
  0x46   :  { %p1206_p4 = scmp.ne.s32.totalorder %s1504_s8, %s1205_s24  ;;  %p1209_p5 = scmp.lt.u32.totalorder %s1205_s24, %s1504_s8 }
  0x48   :  { %p1211_p6 = pnand %p1209_p5, %p1206_p4 }
  0x4a   :  { %1214 = shalt.err (!%p1211_p6)
}
  0x4b   :  { %s1215_s5 = scalar_lea.vmem %s83_s28, 1024  ;;  %p1220_p8 = scmp.lt.s32.totalorder %s83_s28, %s83_s28 }
  0x4c   :  { %p1216_p7 = scmp.ne.s32.totalorder %s83_s28, %s1215_s5  ;;  %p1221_p9 = scmp.lt.s32.totalorder %s1215_s5, %s1215_s5 }
  0x4e   :  { %p1222_p10 = por %p1221_p9, %p1220_p8 }
  0x50   :  { %p1223_p11 = pnand %p1222_p10, %p1216_p7 }
  0x52   :  { %1226 = shalt.err (!%p1223_p11)
}
  0x53   :  { %88 = dma.hbm_to_vmem [thread:$0]  %s1504_s8, 1024, %s83_s28, [#allocation8], %s1238_s22, %s1238_s22, %s1239_s29  }
  0x54   :  { %1227 = dma.done.wait [#allocation3], 1024  }
  0x55   :  { %1228 = vsyncadd [#allocation3], 4294966272 }
  0x56   :  { %1229 = dma.done.wait [#allocation5], 3072  }
  0x57   :  { %1230 = vsyncadd [#allocation5], 4294964224 }
  0x58   :  { %1231 = dma.done.wait [#allocation8], 2048  }
  0x59   :  { %1232 = vsyncadd [#allocation8], 4294965248  ;;  %v1242_v0 = vmov 0.0   ;;  %vm1243_vm0 = vmmov 0   ;;  %v1043_v1 = vld [vmem:[%s1499_s3] sm:$0xff]   ;;  %v1044_v2 = vld [vmem:[%s1499_s3 + $0x8] sm:$0xff]   ;;  %v128_v26 = vlaneseq }
  0x5a   :  { %931 = vmatprep.subr.bf16.mxu0 %v1242_v0  ;;  %947 = vmatprep.mubr.msk.bf16.mxu0 %vm1243_vm0, %v1242_v0  ;;  %v1045_v3 = vld [vmem:[%s1499_s3 + $0x10] sm:$0xff]   ;;  %v1051_v4 = vld [vmem:[#allocation2] sm:$0xff]   ;;  %v1046_v5 = vld [vmem:[%s1499_s3 + $0x18] sm:$0xff]   ;;  %v1244_v46 = vmov 0  }
  0x5b   :  { %951 = vmatprep.subr.bf16.mxu1 %v1242_v0  ;;  %967 = vmatprep.mubr.msk.bf16.mxu1 %vm1243_vm0, %v1242_v0  ;;  %v1052_v6 = vld [vmem:[#allocation2 + $0x8] sm:$0xff]   ;;  %v1047_v7 = vld [vmem:[%s1499_s3 + $0x20] sm:$0xff]   ;;  %v1053_v8 = vld [vmem:[#allocation2 + $0x10] sm:$0xff]   ;;  %v1430_v27 = vshrl.u32 %v128_v26, 7 }
  0x5c   :  { %932 = vmatpush3.bf16.msra.mxu0 %v1043_v1  ;;  %952 = vmatpush3.bf16.msra.mxu1 %v1051_v4  ;;  %v1048_v9 = vld [vmem:[%s1499_s3 + $0x28] sm:$0xff]   ;;  %v1054_v10 = vld [vmem:[#allocation2 + $0x18] sm:$0xff]   ;;  %v1049_v11 = vld [vmem:[%s1499_s3 + $0x30] sm:$0xff]  }
  0x5d   :  { %933 = vmatprep.subr.bf16.mxu0 %v1242_v0  ;;  %953 = vmatprep.subr.bf16.mxu1 %v1242_v0  ;;  %v1050_v12 = vld [vmem:[%s1499_s3 + $0x38] sm:$0xff]   ;;  %v107_v13 = vld [vmem:[%s1496_s0] sm:$0xf]  ;;  %v1056_v15 = vld [vmem:[#allocation2 + $0x28] sm:$0xff]   ;;  %v130_v28 = vsub.s32 0, %v1430_v27  ;;  %v240_v48 = vsub.s32 1, %v1430_v27 }
  0x5e   :  { %v1055_v14 = vld [vmem:[#allocation2 + $0x20] sm:$0xff]   ;;  %v1057_v16 = vld [vmem:[#allocation2 + $0x30] sm:$0xff]   ;;  %v1058_v17 = vld [vmem:[#allocation2 + $0x38] sm:$0xff]  }
  0x5f   :  { %v1059_v18 = vld [vmem:[#allocation4] ss:$8 sps:$4 sm:$0xff]   ;;  %v1061_v19 = vld [vmem:[#allocation4 + $0x4] ss:$8 sps:$4 sm:$0xff]   ;;  %v1064_v20 = vld [vmem:[#allocation4 + $0x14] ss:$8 sps:$4 sm:$0xff]  }
  0x60   :  { %934 = vmatpush3.bf16.msra.mxu0 %v1044_v2  ;;  %954 = vmatpush3.bf16.msra.mxu1 %v1052_v6  ;;  %v1062_v21 = vld [vmem:[#allocation4 + $0x10] ss:$8 sps:$4 sm:$0xff]   ;;  %v1067_v22 = vld [vmem:[#allocation4 + $0x24] ss:$8 sps:$4 sm:$0xff]   ;;  %v1065_v23 = vld [vmem:[#allocation4 + $0x20] ss:$8 sps:$4 sm:$0xff]  }
  0x61   :  { %935 = vmatprep.subr.bf16.mxu0 %v1242_v0  ;;  %955 = vmatprep.subr.bf16.mxu1 %v1242_v0  ;;  %v1070_v24 = vld [vmem:[#allocation4 + $0x34] ss:$8 sps:$4 sm:$0xff]   ;;  %v1068_v25 = vld [vmem:[#allocation4 + $0x30] ss:$8 sps:$4 sm:$0xff]   ;;  %v1436_v29 = vld [vmem:[%s1505_s9] sm:$0xff] }
  0x62   :  { %v131_v30 = vrot.slane %v1436_v29, %v130_v28  ;;  %v1073_v38 = vld [vmem:[#allocation4 + $0x44] ss:$8 sps:$4 sm:$0xff]   ;;  %v1071_v39 = vld [vmem:[#allocation4 + $0x40] ss:$8 sps:$4 sm:$0xff]   ;;  %v1076_v40 = vld [vmem:[#allocation4 + $0x54] ss:$8 sps:$4 sm:$0xff]   ;;  %v241_v49 = vrot.slane %v1436_v29, %v240_v48 }
  0x63   :  { %v1074_v41 = vld [vmem:[#allocation4 + $0x50] ss:$8 sps:$4 sm:$0xff]   ;;  %v1079_v42 = vld [vmem:[#allocation4 + $0x64] ss:$8 sps:$4 sm:$0xff]   ;;  %v1077_v43 = vld [vmem:[#allocation4 + $0x60] ss:$8 sps:$4 sm:$0xff]  }
  0x64   :  { %936 = vmatpush3.bf16.msra.mxu0 %v1045_v3  ;;  %956 = vmatpush3.bf16.msra.mxu1 %v1053_v8  ;;  %v1082_v44 = vld [vmem:[#allocation4 + $0x74] ss:$8 sps:$4 sm:$0xff]   ;;  %v1080_v45 = vld [vmem:[#allocation4 + $0x70] ss:$8 sps:$4 sm:$0xff]   ;;  %v1083_v47 = vld [vmem:[#allocation6] sm:$0xff]  }
  0x65   :  { %937 = vmatprep.subr.bf16.mxu0 %v1242_v0  ;;  %957 = vmatprep.subr.bf16.mxu1 %v1242_v0  ;;  %v1084_v57 = vld [vmem:[#allocation6 + $0x8] sm:$0xff]   ;;  %v1085_v58 = vld [vmem:[#allocation6 + $0x10] sm:$0xff]   ;;  %v1086_v59 = vld [vmem:[#allocation6 + $0x18] sm:$0xff]  }
  0x66   :  { %v1087_v60 = vld [vmem:[#allocation6 + $0x20] sm:$0xff]   ;;  %v1088_v61 = vld [vmem:[#allocation6 + $0x28] sm:$0xff]   ;;  %v1089_v62 = vld [vmem:[#allocation6 + $0x30] sm:$0xff]  }
  0x67   :  { %v1090_v63 = vld [vmem:[#allocation6 + $0x38] sm:$0xff]   ;;  %v1091_v1 = vld [vmem:[#allocation7] sm:$0xff]   ;;  %v1092_v2 = vld [vmem:[#allocation7 + $0x8] sm:$0xff]  }
  0x68   :  { %938 = vmatpush3.bf16.msra.mxu0 %v1046_v5  ;;  %958 = vmatpush3.bf16.msra.mxu1 %v1054_v10  ;;  %v1093_v3 = vld [vmem:[#allocation7 + $0x10] sm:$0xff]   ;;  %v1094_v4 = vld [vmem:[#allocation7 + $0x18] sm:$0xff]   ;;  %v350_v5 = vsub.s32 2, %v1430_v27  ;;  %v111_v6 = vld [vmem:[%s1505_s9 + $0x8] sm:$0xff] }
  0x69   :  { %939 = vmatprep.subr.bf16.mxu0 %v1242_v0  ;;  %959 = vmatprep.subr.bf16.mxu1 %v1242_v0  ;;  %v1097_v26 = vld [vmem:[#allocation7 + $0x30] sm:$0xff]   ;;  %v1098_v28 = vld [vmem:[#allocation7 + $0x38] sm:$0xff]  }
  0x6a   :  { %v355_v8 = vrot.slane %v111_v6, %v350_v5 }
  0x6c   :  { %940 = vmatpush3.bf16.msra.mxu0 %v1047_v7  ;;  %960 = vmatpush3.bf16.msra.mxu1 %v1055_v14  ;;  %v351_v7 = vrot.slane %v1436_v29, %v350_v5 }
  0x6d   :  { %941 = vmatprep.subr.bf16.mxu0 %v1242_v0  ;;  %961 = vmatprep.subr.bf16.mxu1 %v1242_v0 }
  0x70   :  { %942 = vmatpush3.bf16.msra.mxu0 %v1048_v9  ;;  %962 = vmatpush3.bf16.msra.mxu1 %v1056_v15 }
  0x71   :  { %943 = vmatprep.subr.bf16.mxu0 %v1242_v0  ;;  %963 = vmatprep.subr.bf16.mxu1 %v1242_v0 }
  0x74   :  { %944 = vmatpush3.bf16.msra.mxu0 %v1049_v11  ;;  %964 = vmatpush3.bf16.msra.mxu1 %v1057_v16 }
  0x75   :  { %945 = vmatprep.subr.bf16.mxu0 %v1242_v0  ;;  %965 = vmatprep.subr.bf16.mxu1 %v1242_v0 }
  0x78   :  { %946 = vmatpush3.bf16.msra.mxu0 %v1050_v12  ;;  %966 = vmatpush3.bf16.msra.mxu1 %v1058_v17  ;;  %v109_v17 = vld [vmem:[%s1498_s2] sm:$0xff] }
  0x79   :  { %971 = vmatprep.subr.bf16.mxu1 %v1242_v0  ;;  %436 = vmatprep.subr.bf16.mxu0 %v1061_v19 }
  0x7b   :  { %948 = vmatmul.mubr.bf16.vlgmr.msra.gmra.mrb[0].mxu0 %v107_v13 }
  0x7c   :  { %437 = vmatpush1.bf16.msra.mxu0 %v1059_v18  ;;  %468 = vmatprep.mubr.bf16.mxu0 %v1244_v46  ;;  %v1106_v46 = vld [vmem:[#allocation9 + $0x38] sm:$0xff]  }
  0x7d   :  { %438 = vmatprep.subr.bf16.mxu0 %v1064_v20  ;;  %v108_v20 = vld [vmem:[%s1497_s1] sm:$0xff] }
  0x80   :  { %439 = vmatpush1.bf16.msra.mxu0 %v1062_v21 }
  0x81   :  { %440 = vmatprep.subr.bf16.mxu0 %v1067_v22 }
  0x84   :  { %441 = vmatpush1.bf16.msra.mxu0 %v1065_v23 }
  0x85   :  { %442 = vmatprep.subr.bf16.mxu0 %v1070_v24  ;;  %v1095_v24 = vld [vmem:[#allocation7 + $0x20] sm:$0xff]  }
  0x88   :  { %443 = vmatpush1.bf16.msra.mxu0 %v1068_v25  ;;  %v1096_v25 = vld [vmem:[#allocation7 + $0x28] sm:$0xff]  }
  0x89   :  { %444 = vmatprep.subr.bf16.mxu0 %v1073_v38 }
  0x8c   :  { %445 = vmatpush1.bf16.msra.mxu0 %v1071_v39 }
  0x8d   :  { %446 = vmatprep.subr.bf16.mxu0 %v1076_v40 }
  0x90   :  { %447 = vmatpush1.bf16.msra.mxu0 %v1074_v41 }
  0x91   :  { %448 = vmatprep.subr.bf16.mxu0 %v1079_v42 }
  0x94   :  { %449 = vmatpush1.bf16.msra.mxu0 %v1077_v43  ;;  %v1103_v43 = vld [vmem:[#allocation9 + $0x20] sm:$0xff]  }
  0x95   :  { %450 = vmatprep.subr.bf16.mxu0 %v1082_v44  ;;  %v1104_v44 = vld [vmem:[#allocation9 + $0x28] sm:$0xff]  }
  0x98   :  { %451 = vmatpush1.bf16.msra.mxu0 %v1080_v45  ;;  %v1105_v45 = vld [vmem:[#allocation9 + $0x30] sm:$0xff]  }
  0x99   :  { %991 = vmatprep.subr.bf16.mxu0 %v1242_v0 }
 0x14e   :  { %v214_v31 = vpop.f32.mrb[0].mxu0 }
 0x14f   :  { %v215_v32 = vadd.f32 %v214_v31, %v131_v30  ;;  %v949_v33 = vpop.f32.mrb[1].mxu0  ;;  %v1099_v30 = vld [vmem:[#allocation9] sm:$0xff]   ;;  %v1100_v31 = vld [vmem:[#allocation9 + $0x8] sm:$0xff]  }
 0x150   :  { %v217_v34 = vpop.f32.mrb[2].mxu0  ;;  %v1102_v33 = vld [vmem:[#allocation9 + $0x18] sm:$0xff]  }
 0x151   :  { %1107 = vtanh.f32 %v215_v32  ;;  %v950_v35 = vpop.f32.mrb[3].mxu0  ;;  %v1101_v32 = vld [vmem:[#allocation9 + $0x10] sm:$0xff]   ;;  %v502_v34 = vsub.s32 3, %v1430_v27 }
 0x153   :  { %v503_v35 = vrot.slane %v1436_v29, %v502_v34 }
 0x15b   :  { %v1108_v36 = vpop.eup %1107 }
 0x15c   :  { %v221_v37 = vpack.c.bf16 %v1108_v36, %v1108_v36 }
 0x15e   :  { %968 = vmatmul.mubr.bf16.vlgmr.msra.gmra.mrb[0].mxu1 %v221_v37 }
 0x15f   :  { %987 = vmatprep.mubr.msk.bf16.mxu1 %vm1243_vm0, %v1242_v0  ;;  %972 = vmatpush3.bf16.msra.mxu1 %v1083_v47  ;;  %v612_v47 = vsub.s32 4, %v1430_v27 }
 0x160   :  { %973 = vmatprep.subr.bf16.mxu1 %v1242_v0 }
 0x161   :  { %v613_v48 = vrot.slane %v1436_v29, %v612_v47 }
 0x163   :  { %974 = vmatpush3.bf16.msra.mxu1 %v1084_v57 }
 0x164   :  { %975 = vmatprep.subr.bf16.mxu1 %v1242_v0 }
 0x167   :  { %976 = vmatpush3.bf16.msra.mxu1 %v1085_v58 }
 0x168   :  { %977 = vmatprep.subr.bf16.mxu1 %v1242_v0 }
 0x16b   :  { %978 = vmatpush3.bf16.msra.mxu1 %v1086_v59 }
 0x16c   :  { %979 = vmatprep.subr.bf16.mxu1 %v1242_v0 }
 0x16f   :  { %980 = vmatpush3.bf16.msra.mxu1 %v1087_v60 }
 0x170   :  { %981 = vmatprep.subr.bf16.mxu1 %v1242_v0 }
 0x173   :  { %982 = vmatpush3.bf16.msra.mxu1 %v1088_v61 }
 0x174   :  { %983 = vmatprep.subr.bf16.mxu1 %v1242_v0 }
 0x177   :  { %984 = vmatpush3.bf16.msra.mxu1 %v1089_v62 }
 0x178   :  { %985 = vmatprep.subr.bf16.mxu1 %v1242_v0 }
 0x17b   :  { %986 = vmatpush3.bf16.msra.mxu1 %v1090_v63 }
 0x17c   :  { %1011 = vmatprep.subr.bf16.mxu1 %v1242_v0 }
 0x231   :  { %v324_v50 = vpop.f32.mrb[0].mxu1 }
 0x232   :  { %v325_v51 = vadd.f32 %v324_v50, %v241_v49  ;;  %v969_v52 = vpop.f32.mrb[1].mxu1 }
 0x233   :  { %v327_v53 = vpop.f32.mrb[2].mxu1 }
 0x234   :  { %1109 = vtanh.f32 %v325_v51  ;;  %v970_v54 = vpop.f32.mrb[3].mxu1 }
 0x23e   :  { %v1110_v55 = vpop.eup %1109 }
 0x23f   :  { %v331_v56 = vpack.c.bf16 %v1110_v55, %v1110_v55 }
 0x241   :  { %469 = vmatmul.mubr.bf16.vlgmr.msra.gmra.mrb[4].mxu0 %v331_v56  ;;  %v722_v56 = vsub.s32 5, %v1430_v27 }
 0x242   :  { %1007 = vmatprep.mubr.msk.bf16.mxu0 %vm1243_vm0, %v1242_v0  ;;  %992 = vmatpush3.bf16.msra.mxu0 %v1091_v1 }
 0x243   :  { %993 = vmatprep.subr.bf16.mxu0 %v1242_v0  ;;  %v723_v57 = vrot.slane %v1436_v29, %v722_v56 }
 0x246   :  { %994 = vmatpush3.bf16.msra.mxu0 %v1092_v2 }
 0x247   :  { %995 = vmatprep.subr.bf16.mxu0 %v1242_v0 }
 0x24a   :  { %996 = vmatpush3.bf16.msra.mxu0 %v1093_v3 }
 0x24b   :  { %997 = vmatprep.subr.bf16.mxu0 %v1242_v0 }
 0x24e   :  { %998 = vmatpush3.bf16.msra.mxu0 %v1094_v4 }
 0x24f   :  { %999 = vmatprep.subr.bf16.mxu0 %v1242_v0 }
 0x252   :  { %1000 = vmatpush3.bf16.msra.mxu0 %v1095_v24 }
 0x253   :  { %1001 = vmatprep.subr.bf16.mxu0 %v1242_v0 }
 0x256   :  { %1002 = vmatpush3.bf16.msra.mxu0 %v1096_v25 }
 0x257   :  { %1003 = vmatprep.subr.bf16.mxu0 %v1242_v0 }
 0x25a   :  { %1004 = vmatpush3.bf16.msra.mxu0 %v1097_v26 }
 0x25b   :  { %1005 = vmatprep.subr.bf16.mxu0 %v1242_v0 }
 0x25e   :  { %1006 = vmatpush3.bf16.msra.mxu0 %v1098_v28 }
 0x314   :  { %v470_v9 = vpop.f32.mrb[4].mxu0 }
 0x315   :  { %v471_v10 = vadd.f32 %v470_v9, %v351_v7  ;;  %v472_v11 = vpop.f32.mrb[5].mxu0 }
 0x316   :  { %v473_v12 = vadd.f32 %v472_v11, %v355_v8  ;;  %v474_v13 = vpop.f32.mrb[6].mxu0 }
 0x317   :  { %813 = vst [vmem:[%s1507_s11] sm:$0xff] %v471_v10  ;;  %v475_v14 = vpop.f32.mrb[7].mxu0 }
 0x318   :  { %v477_v15 = vmul.f32 0.5, %v473_v12  ;;  %814 = vst [vmem:[%s1508_s12] sm:$0xff] %v473_v12 }
 0x31a   :  { %v478_v16 = vmul.f32 1.442695, %v477_v15 }
 0x31c   :  { %1111 = vpow2.f32 %v478_v16 }
 0x326   :  { %v1112_v18 = vpop.eup %1111 }
 0x327   :  { %v480_v19 = vmul.f32 %v1112_v18, %v109_v17 }
 0x329   :  { %v481_v21 = vadd.f32 %v480_v19, %v471_v10 }
 0x32b   :  { %v482_v22 = vadd.f32 %v481_v21, %v108_v20 }
 0x32d   :  { %v483_v23 = vpack.c.bf16 %v482_v22, %v482_v22 }
 0x32f   :  { %988 = vmatmul.mubr.bf16.vlgmr.msra.gmra.mrb[4].mxu1 %v483_v23 }
 0x330   :  { %1027 = vmatprep.mubr.msk.bf16.mxu1 %vm1243_vm0, %v1242_v0  ;;  %1012 = vmatpush3.bf16.msra.mxu1 %v1099_v30 }
 0x331   :  { %1013 = vmatprep.subr.bf16.mxu1 %v1242_v0 }
 0x334   :  { %1014 = vmatpush3.bf16.msra.mxu1 %v1100_v31 }
 0x335   :  { %1015 = vmatprep.subr.bf16.mxu1 %v1242_v0 }
 0x338   :  { %1016 = vmatpush3.bf16.msra.mxu1 %v1101_v32 }
 0x339   :  { %1017 = vmatprep.subr.bf16.mxu1 %v1242_v0 }
 0x33c   :  { %1018 = vmatpush3.bf16.msra.mxu1 %v1102_v33 }
 0x33d   :  { %1019 = vmatprep.subr.bf16.mxu1 %v1242_v0 }
 0x340   :  { %1020 = vmatpush3.bf16.msra.mxu1 %v1103_v43 }
 0x341   :  { %1021 = vmatprep.subr.bf16.mxu1 %v1242_v0 }
 0x344   :  { %1022 = vmatpush3.bf16.msra.mxu1 %v1104_v44 }
 0x345   :  { %1023 = vmatprep.subr.bf16.mxu1 %v1242_v0 }
 0x348   :  { %1024 = vmatpush3.bf16.msra.mxu1 %v1105_v45 }
 0x349   :  { %1025 = vmatprep.subr.bf16.mxu1 %v1242_v0 }
 0x34c   :  { %1026 = vmatpush3.bf16.msra.mxu1 %v1106_v46 }
 0x402   :  { %v586_v36 = vpop.f32.mrb[4].mxu1 }
 0x403   :  { %v587_v37 = vadd.f32 %v586_v36, %v503_v35  ;;  %v989_v38 = vpop.f32.mrb[5].mxu1 }
 0x404   :  { %v589_v39 = vpop.f32.mrb[6].mxu1 }
 0x405   :  { %1113 = vtanh.f32 %v587_v37  ;;  %v990_v40 = vpop.f32.mrb[7].mxu1 }
 0x40f   :  { %v1114_v41 = vpop.eup %1113 }
 0x410   :  { %v593_v42 = vpack.c.bf16 %v1114_v41, %v1114_v41 }
 0x412   :  { %1008 = vmatmul.mubr.bf16.vlgmr.msra.gmra.mrb[8].mxu0 %v593_v42 }
 0x4e5   :  { %v696_v49 = vpop.f32.mrb[8].mxu0 }
 0x4e6   :  { %v697_v50 = vadd.f32 %v696_v49, %v613_v48  ;;  %v1009_v51 = vpop.f32.mrb[9].mxu0 }
 0x4e7   :  { %v699_v52 = vpop.f32.mrb[10].mxu0 }
 0x4e8   :  { %1115 = vtanh.f32 %v697_v50  ;;  %v1010_v53 = vpop.f32.mrb[11].mxu0 }
 0x4f2   :  { %v1116_v54 = vpop.eup %1115 }
 0x4f3   :  { %v703_v55 = vpack.c.bf16 %v1116_v54, %v1116_v54 }
 0x4f5   :  { %1028 = vmatmul.mubr.bf16.vlgmr.msra.gmra.mrb[8].mxu1 %v703_v55 }
 0x5c8   :  { %v806_v0 = vpop.f32.mrb[8].mxu1 }
 0x5c9   :  { %v807_v58 = vadd.f32 %v806_v0, %v723_v57  ;;  %v1029_v59 = vpop.f32.mrb[9].mxu1 }
 0x5ca   :  { %v809_v60 = vpop.f32.mrb[10].mxu1 }
 0x5cb   :  { %812 = vst [vmem:[%s1506_s10] sm:$0xff] %v807_v58  ;;  %v1030_v61 = vpop.f32.mrb[11].mxu1 }
 0x5cc   :  { %827 = vsyncpa [#allocation3], 1 }
 0x5cd   :  { %828 = vsyncpa [#allocation5], 1 }
 0x5ce   :  { %829 = vsyncpa [#allocation8], 1 }

</bundles_post_ra>
